<compile_context>
chip_gen: v5e
topology: v5e:2x2
jax: 0.10.0
libtpu: 0.0.40
codegen_flags: <defaults>
</compile_context>

<pallas_src>
import functools

import jax
import jax.numpy as jnp
from jax.experimental import pallas as pl
from jax.experimental.pallas import tpu as pltpu


def _infonce_kernel(q_ref, k_ref, selfexp_ref, pos_ref, out_ref, acc_ref, *,
                    acc_lanes):
    k_idx = pl.program_id(1)
    nk = pl.num_programs(1)

    @pl.when(k_idx == 0)
    def _init():
        acc_ref[...] = jnp.zeros_like(acc_ref)

    # (tq, tk) similarities already scaled by 1/temperature (folded into q in
    # the wrapper). NT-form dot_general -> MXU, f32 accumulation.
    sim = jax.lax.dot_general(
        q_ref[...], k_ref[...],
        dimension_numbers=(((1,), (1,)), ((), ())),
        preferred_element_type=jnp.float32)
    e = jnp.exp(sim)

    if acc_lanes > 1:
        # Lane-dense accumulation: add 128-lane vreg columns with full-width
        # VPU adds; the cross-lane (XLU) reduce is deferred to the finalize.
        acc = acc_ref[...]
        tk = e.shape[1]
        for g in range(tk // acc_lanes):
            acc = acc + e[:, g * acc_lanes:(g + 1) * acc_lanes]
        acc_ref[...] = acc
    else:
        # Small-tile fallback (tk not a multiple of 128).
        acc_ref[...] += jnp.sum(e, axis=1, keepdims=True)

    @pl.when(k_idx == nk - 1)
    def _fin():
        denom = jnp.sum(acc_ref[...], axis=-1, keepdims=True)      # (tq, 1)
        # Per-row loss = log(denominator_without_self) - positives / T.
        # The (tq, 1) store is masked but happens only once per row tile;
        # keeping it sublane-major avoids an in-kernel transpose of the
        # per-row scalars.
        out_ref[...] = jnp.log(denom - selfexp_ref[...]) - pos_ref[...]


def _pick_tile(n, target, align):
    """Largest tile <= target that divides n and is a multiple of `align`,
    falling back to the full extent (always a legal block)."""
    if n <= target:
        return n
    t = (target // align) * align
    while t >= align:
        if n % t == 0:
            return t
        t -= align
    return n


def info_nce_loss(z_i, z_j, temperature=0.5, matmul_dtype=None):
    """Pallas implementation of InfoNceLoss.forward. Returns a float32 scalar.

    matmul_dtype: dtype for the MXU operands. Default (None) keeps the input
    dtype (exact f32 sims for f32 inputs); pass jnp.bfloat16 for the fast
    native-MXU path when bf16-rounded similarities are acceptable.
    """
    assert z_i.shape == z_j.shape and z_i.ndim == 2
    batch, dim = z_i.shape
    n = 2 * batch
    inv_t = 1.0 / float(temperature)
    mm_dtype = jnp.dtype(matmul_dtype) if matmul_dtype is not None else jnp.dtype(z_i.dtype)
    mm_bytes = mm_dtype.itemsize

    # ---- O(N*D) preprocessing (one XLA pass; negligible vs the O(N^2*D) kernel)
    reps = jnp.concatenate([z_i, z_j], axis=0).astype(jnp.float32)       # (N, D)
    inv_norm = jax.lax.rsqrt(
        jnp.maximum(jnp.sum(reps * reps, axis=-1, keepdims=True), 1e-16))
    rn = reps * inv_norm                                                  # unit rows, f32

    # positives[i] = <rn[i], rn[(i+B) % N]>   (reference's diag(+B) / diag(-B)).
    positives = jnp.sum(rn * jnp.roll(rn, -batch, axis=0), axis=-1, keepdims=True)
    pos_term = (positives * inv_t).astype(jnp.float32)                    # (N, 1)

    # MXU operands: fold 1/T into the query side only (scaled in f32 before any
    # cast); keys are the plain normalized rows.
    q_op = (rn * inv_t).astype(mm_dtype)                                  # (N, D)
    k_op = rn.astype(mm_dtype)                                            # (N, D)

    # Self term exp(sim[i,i]/T), computed from the same operands the MXU sees so
    # the subtraction matches what was accumulated (important for bf16).
    self_exp = jnp.exp(jnp.sum(q_op.astype(jnp.float32) * k_op.astype(jnp.float32),
                               axis=-1, keepdims=True))                   # (N, 1)

    # ---- VMEM-aware tile selection ------------------------------------------
    try:
        vmem_cap = int(pltpu.get_tpu_info().vmem_capacity_bytes)
    except Exception:
        vmem_cap = 64 * 1024 * 1024            # assume the smallest (v7x) if unknown
    budget = int(vmem_cap * 0.6)

    # Keep >= 2 row blocks so the "parallel" axis can use both TensorCores (v7x).
    tq_target = max(8, min(256, n // 2))
    tq = _pick_tile(n, tq_target, 8)

    # Larger key tiles on chips with VMEM headroom (fewer inner grid steps);
    # prefer 128-aligned tk so the MXU stays fully fed and the accumulator is
    # lane-dense.
    tk_target = 1024 if vmem_cap >= (100 << 20) else 512
    def _pick_tk(tgt):
        t = _pick_tile(n, tgt, 128)
        if n > tgt and t == n:
            t = _pick_tile(n, tgt, 8)
        return t
    tk = _pick_tk(tk_target)

    def _vmem_est(tq_, tk_):
        blocks = 2 * (tq_ + tk_) * dim * mm_bytes      # double-buffered q/k tiles
        blocks += 2 * 3 * tq_ * 4                      # self_exp, positives, out (tq,1)
        return blocks + tq_ * 128 * 4                  # accumulator scratch

    while _vmem_est(tq, tk) > budget and tk_target > 128:
        tk_target //= 2
        tk = _pick_tk(tk_target)
    tq_t = tq
    while _vmem_est(tq, tk) > budget and tq_t > 8:
        tq_t = max(8, tq_t // 2)
        tq = _pick_tile(n, tq_t, 8)

    nq, nk = n // tq, n // tk
    acc_lanes = 128 if (tk % 128 == 0) else 1
    vmem_limit = min(max(_vmem_est(tq, tk) + (8 << 20), 32 << 20), vmem_cap)

    kernel = functools.partial(_infonce_kernel, acc_lanes=acc_lanes)

    per_row = pl.pallas_call(
        kernel,
        out_shape=jax.ShapeDtypeStruct((n, 1), jnp.float32),
        grid_spec=pltpu.PrefetchScalarGridSpec(
            num_scalar_prefetch=0,
            grid=(nq, nk),
            in_specs=[
                pl.BlockSpec((tq, dim), lambda q, k: (q, 0)),   # normalized rows / T
                pl.BlockSpec((tk, dim), lambda q, k: (k, 0)),   # normalized key rows
                pl.BlockSpec((tq, 1), lambda q, k: (q, 0)),     # exp(self sim / T)
                pl.BlockSpec((tq, 1), lambda q, k: (q, 0)),     # positives / T
            ],
            out_specs=pl.BlockSpec((tq, 1), lambda q, k: (q, 0)),
            scratch_shapes=[pltpu.VMEM((tq, acc_lanes), jnp.float32)],
        ),
        compiler_params=pltpu.CompilerParams(
            dimension_semantics=("parallel", "arbitrary"),
            vmem_limit_bytes=int(vmem_limit),
        ),
    )(q_op, k_op, self_exp, pos_term)

    # Final O(N) reduce is negligible next to the O(N^2 * D) kernel work.
    return jnp.sum(per_row) / n


def _reference_info_nce(z_i, z_j, temperature=0.5):
    """Plain-JAX reference mirroring the PyTorch module."""
    b = z_i.shape[0]
    reps = jnp.concatenate([z_i, z_j], axis=0).astype(jnp.float32)
    norm = jnp.maximum(jnp.linalg.norm(reps, axis=-1, keepdims=True), 1e-8)
    rn = reps / norm
    sim = rn @ rn.T
    sim_ij = jnp.diagonal(sim, offset=b)
    sim_ji = jnp.diagonal(sim, offset=-b)
    positives = jnp.concatenate([sim_ij, sim_ji], axis=0)
    neg_mask = 1.0 - jnp.eye(2 * b, dtype=jnp.float32)
    nominator = jnp.exp(positives / temperature)
    denominator = jnp.sum(neg_mask * jnp.exp(sim / temperature), axis=1)
    loss_partial = -jnp.log(nominator / denominator)
    return jnp.sum(loss_partial) / (2 * b)


if __name__ == "__main__":
    key = jax.random.PRNGKey(0)
    ok = True
    # (8, 32): tiny case, exercises nq=2 with small tiles and the non-128 tk
    # fallback; (256, 64): N=512 exercises 128-aligned tiling + lane-dense acc.
    for (batch, dim) in [(8, 32), (256, 64)]:
        key, k1, k2 = jax.random.split(key, 3)
        z_i = jax.random.normal(k1, (batch, dim), dtype=jnp.float32)
        z_j = jax.random.normal(k2, (batch, dim), dtype=jnp.float32)

        ref = _reference_info_nce(z_i, z_j, temperature=0.5)

        # Exact-dtype (f32) MXU path.
        loss = info_nce_loss(z_i, z_j, temperature=0.5)
        jax.block_until_ready(loss)
        if not jnp.allclose(loss, ref, rtol=1e-4, atol=1e-4):
            ok = False
            print("MISMATCH f32", batch, dim, float(loss), float(ref))

        # Fast bf16 MXU path (looser tolerance: bf16-rounded similarities).
        loss_bf16 = info_nce_loss(z_i, z_j, temperature=0.5,
                                  matmul_dtype=jnp.bfloat16)
        jax.block_until_ready(loss_bf16)
        if not jnp.allclose(loss_bf16, ref, rtol=5e-2, atol=5e-2):
            ok = False
            print("MISMATCH bf16", batch, dim, float(loss_bf16), float(ref))

    if ok:
        print("KERNEL_OK")
</pallas_src>

<mosaic_0001>
module attributes {stable_mosaic.version = 11 : i64} {
  func.func @_infonce_kernel(%arg0: i32, %arg1: i32, %arg2: memref<8x32xf32, #tpu.memory_space<vmem>>, %arg3: memref<16x32xf32, #tpu.memory_space<vmem>>, %arg4: memref<8x1xf32, #tpu.memory_space<vmem>>, %arg5: memref<8x1xf32, #tpu.memory_space<vmem>>, %arg6: memref<8x1xf32, #tpu.memory_space<vmem>>, %arg7: memref<8x1xf32, #tpu.memory_space<vmem>>) attributes {dimension_semantics = [#tpu.dimension_semantics<parallel>, #tpu.dimension_semantics<arbitrary>], iteration_bounds = array<i64: 2, 1>, scalar_prefetch = 0 : i64, scratch_operands = 1 : i64, tpu.core_type = #tpu.core_type<tc>, window_params = [{transform_indices = @transform_0, window_bounds = array<i64: 8, 32>}, {transform_indices = @transform_1, window_bounds = array<i64: 16, 32>}, {transform_indices = @transform_2, window_bounds = array<i64: 8, 1>}, {transform_indices = @transform_3, window_bounds = array<i64: 8, 1>}, {transform_indices = @transform_4, window_bounds = array<i64: 8, 1>}]} {
    %c0_i32 = arith.constant 0 : i32
    %0 = arith.cmpi eq, %arg1, %c0_i32 : i32
    %1 = arith.extui %0 : i1 to i32
    %c0_i32_0 = arith.constant 0 : i32
    %2 = arith.cmpi ne, %1, %c0_i32_0 : i32
    scf.if %2 {
      %cst_11 = arith.constant 0.000000e+00 : f32
      %15 = vector.broadcast %cst_11 : f32 to vector<8x1xf32>
      %c0_12 = arith.constant 0 : index
      %c0_13 = arith.constant 0 : index
      %16 = vector.load %arg7[%c0_12, %c0_13] : memref<8x1xf32, #tpu.memory_space<vmem>>, vector<8x1xf32>
      tpu.vector_store %arg7[%c0_12, %c0_13], %15 {strides = array<i32>} : memref<8x1xf32, #tpu.memory_space<vmem>>, vector<8x1xf32>,
    } else {
    }
    %c0 = arith.constant 0 : index
    %c0_1 = arith.constant 0 : index
    %3 = vector.load %arg2[%c0, %c0_1] : memref<8x32xf32, #tpu.memory_space<vmem>>, vector<8x32xf32>
    %c0_2 = arith.constant 0 : index
    %c0_3 = arith.constant 0 : index
    %4 = vector.load %arg3[%c0_2, %c0_3] : memref<16x32xf32, #tpu.memory_space<vmem>>, vector<16x32xf32>
    %cst = arith.constant dense<0.000000e+00> : vector<8x16xf32>
    %5 = tpu.matmul %3, %4, %cst {dimension_numbers = #tpu.dot_dimension_numbers<[1], [1], [0], [0], [0, 0, 1, 0], [], []>} : vector<8x32xf32>, vector<16x32xf32>, vector<8x16xf32> -> vector<8x16xf32>
    %6 = math.exp %5 : vector<8x16xf32>
    %c0_4 = arith.constant 0 : index
    %c0_5 = arith.constant 0 : index
    %7 = vector.load %arg7[%c0_4, %c0_5] : memref<8x1xf32, #tpu.memory_space<vmem>>, vector<8x1xf32>
    %cst_6 = arith.constant dense<0.000000e+00> : vector<8xf32>
    %8 = vector.multi_reduction <add>, %6, %cst_6 [1] : vector<8x16xf32> to vector<8xf32>
    %9 = vector.shape_cast %8 : vector<8xf32> to vector<8x1xf32>
    %10 = arith.addf %7, %9 : vector<8x1xf32>
    %c0_7 = arith.constant 0 : index
    %c0_8 = arith.constant 0 : index
    %11 = vector.load %arg7[%c0_7, %c0_8] : memref<8x1xf32, #tpu.memory_space<vmem>>, vector<8x1xf32>
    tpu.vector_store %arg7[%c0_7, %c0_8], %10 {strides = array<i32>} : memref<8x1xf32, #tpu.memory_space<vmem>>, vector<8x1xf32>,
    %c0_i32_9 = arith.constant 0 : i32
    %12 = arith.cmpi eq, %arg1, %c0_i32_9 : i32
    %13 = arith.extui %12 : i1 to i32
    %c0_i32_10 = arith.constant 0 : i32
    %14 = arith.cmpi ne, %13, %c0_i32_10 : i32
    scf.if %14 {
      %c0_11 = arith.constant 0 : index
      %c0_12 = arith.constant 0 : index
      %15 = vector.load %arg7[%c0_11, %c0_12] : memref<8x1xf32, #tpu.memory_space<vmem>>, vector<8x1xf32>
      %cst_13 = arith.constant dense<0.000000e+00> : vector<8xf32>
      %16 = vector.multi_reduction <add>, %15, %cst_13 [1] : vector<8x1xf32> to vector<8xf32>
      %17 = vector.shape_cast %16 : vector<8xf32> to vector<8x1xf32>
      %c0_14 = arith.constant 0 : index
      %c0_15 = arith.constant 0 : index
      %18 = vector.load %arg4[%c0_14, %c0_15] : memref<8x1xf32, #tpu.memory_space<vmem>>, vector<8x1xf32>
      %19 = arith.subf %17, %18 : vector<8x1xf32>
      %20 = math.log %19 : vector<8x1xf32>
      %c0_16 = arith.constant 0 : index
      %c0_17 = arith.constant 0 : index
      %21 = vector.load %arg5[%c0_16, %c0_17] : memref<8x1xf32, #tpu.memory_space<vmem>>, vector<8x1xf32>
      %22 = arith.subf %20, %21 : vector<8x1xf32>
      %c0_18 = arith.constant 0 : index
      %c0_19 = arith.constant 0 : index
      %23 = vector.load %arg6[%c0_18, %c0_19] : memref<8x1xf32, #tpu.memory_space<vmem>>, vector<8x1xf32>
      tpu.vector_store %arg6[%c0_18, %c0_19], %22 {strides = array<i32>} : memref<8x1xf32, #tpu.memory_space<vmem>>, vector<8x1xf32>,
    } else {
    }
    return
  }
  func.func @transform_0(%arg0: i32, %arg1: i32) -> (i32, i32) {
    %c0_i32 = arith.constant 0 : i32
    %c0_i32_0 = arith.constant 0 : i32
    return %arg0, %c0_i32 : i32, i32
  }
  func.func @transform_1(%arg0: i32, %arg1: i32) -> (i32, i32) {
    %c0_i32 = arith.constant 0 : i32
    %c0_i32_0 = arith.constant 0 : i32
    return %arg1, %c0_i32 : i32, i32
  }
  func.func @transform_2(%arg0: i32, %arg1: i32) -> (i32, i32) {
    %c0_i32 = arith.constant 0 : i32
    %c0_i32_0 = arith.constant 0 : i32
    return %arg0, %c0_i32 : i32, i32
  }
  func.func @transform_3(%arg0: i32, %arg1: i32) -> (i32, i32) {
    %c0_i32 = arith.constant 0 : i32
    %c0_i32_0 = arith.constant 0 : i32
    return %arg0, %c0_i32 : i32, i32
  }
  func.func @transform_4(%arg0: i32, %arg1: i32) -> (i32, i32) {
    %c0_i32 = arith.constant 0 : i32
    %c0_i32_0 = arith.constant 0 : i32
    return %arg0, %c0_i32 : i32, i32
  }
}

</mosaic_0001>

<bundles_post_ra>
// kernel: tpu_custom_call.1
= control target key start
LH: loop header
LB: loop body
LE: loop exit
PB: predicated region body
PF: predicated region fallthrough
CT: control target
= control target key end

     0   :  { %s517_s15 = smov 0   ;;  %s519_s16 = smov 0   ;;  %s571_s0 = inlined_call_operand.vmem [shape: f32[16,32], index: 0, kind: input, shape index: {}]   ;;  %s572_s1 = inlined_call_operand.vmem [shape: f32[16,32], index: 1, kind: input, shape index: {}]   ;;  %s573_s2 = inlined_call_operand.vmem [shape: f32[16,1], index: 2, kind: input, shape index: {}]   ;;  %s574_s3 = inlined_call_operand.vmem [shape: f32[16,1], index: 3, kind: input, shape index: {}]   ;;  %s575_s4 = inlined_call_operand.vmem [shape: f32[16,1], index: 4, kind: output, shape index: {}]  }
   0x1   :  { %s521_s17 = smov 0  }
   0x2 LB: > { %s26_s18 = sadd.s32 1, %s485_s16  ;;  %p428_p0 = scmp.ge.s32.totalorder %s489_s17, 1  ;;  %s489_s17 = sphi %s521_s17, %s14_s17   ;;  %s485_s16 = sphi %s519_s16, %s577_s16   ;;  %s481_s15 = sphi %s517_s15, %s576_s15  }
   0x3   : > { %p28_p1 = scmp.ge.s32.totalorder %s26_s18, 2  ;;  %p202_p2 = scmp.lt.s32.totalorder %s489_s17, 3 }
   0x5   : > { %s579_s18 = smov (%p28_p1, %s26_s18), 0  ;;  %p203_p3 = pnand %p428_p0, %p202_p2 }
   0x6   : > { %p239_p4 = scmp.lt.s32.totalorder (!%p203_p3), %s481_s15, 1 }
   0x7   : > { %206 = sbr.rel (%p203_p3) target bundleno = 296 (0x128), region = 36 }
   0xc   : > { %v269_v0 = vld [vmem:[%s572_s1 + $0x8] sm:$0xff]  ;;  %vm270_vm0 = vcmask 261120   ;;  %v268_v1 = vld [vmem:[%s572_s1] sm:$0xff]  ;;  %s581_s15 = smov (!%p239_p4, %s481_s15), 1  ;;  %vm265_vm1 = vcmask 7168   ;;  %v491_v3 = vmov 0.0  }
   0xd   : > { %433 = vmatpush.xpose.msk.msra.mxu0 %vm270_vm0, %v269_v0  ;;  %s541_s23 = sshll.u32 %s581_s15, 3  ;;  %266 = vst.msk [vmem:[#allocation2] sm:$0xff] %vm265_vm1, %v491_v3  ;;  %vm303_vm2 = vcmask 130048  }
   0xe   : > { %s242_s26 = scalar_lea.vmem %s571_s0, %s541_s23  ;;  %s252_s29 = scalar_lea.vmem %s573_s2, %s541_s23 }
   0xf   : > { %v267_v2 = vld [vmem:[%s242_s26] sm:$0xff]  ;;  %s256_s6 = scalar_lea.vmem %s574_s3, %s541_s23  ;;  %s260_s9 = scalar_lea.vmem %s575_s4, %s541_s23 }
  0x10   : > { %v315_v11 = vld [vmem:[%s252_s29] sm:$0xff] }
  0x11   : > { %434 = vmatpush.xpose.msk.msra.mxu0 %vm270_vm0, %v268_v1  ;;  %v319_v15 = vld [vmem:[%s256_s6] sm:$0xff] }
  0x14   : > { %435 = vmatmul.msk.f32.vlgmr.msra.gmra.mxu0 %vm270_vm0, %v267_v2  ;;  %v302_v8 = vld [vmem:[#allocation2] sm:$0xff] }
  0x91   : > { %v297_v4 = vpop.f32.mrf.mxu0 }
  0x92   : > { %v300_v5 = vmul.f32 1.442695, %v297_v4 }
  0x94   : > { %463 = vpow2.f32 %v300_v5 }
  0x9a   : > { %v464_v6 = vpop.eup %463 }
  0x9b   : > { %v304_v7 = vsel %vm303_vm2, %v464_v6, 0.0 }
  0x9c   : > { %305 = vadd.xlane.f32.xlu0 %v304_v7 }
 0x10f   : > { %v306_v9 = vpop.xlane.xlu0 %305 }
 0x110   : > { %v307_v10 = vadd.f32 %v306_v9, %v302_v8 }
 0x112   : > { %309 = vst.msk [vmem:[#allocation2] sm:$0xff] %vm265_vm1, %v307_v10 }
 0x119   : > { %v313_v12 = vld [vmem:[#allocation2] sm:$0xff] }
 0x11a   : > { %v316_v13 = vsub.f32 %v313_v12, %v315_v11 }
 0x11c   : > { %465 = vlog2.f32 %v316_v13 }
 0x122   : > { %v466_v14 = vpop.eup %465 }
 0x123   : > { %v318_v16 = vmul.f32 0.6931472, %v466_v14 }
 0x125   : > { %v320_v17 = vsub.f32 %v318_v16, %v319_v15 }
 0x127   : > { %321 = vst.msk [vmem:[%s260_s9] sm:$0xff] %vm265_vm1, %v320_v17 }
 0x128 PF: > { %s14_s17 = sadd.s32 1, %s489_s17   ;;  %s576_s15 = smov %s485_s16 }
 0x129   : > { %p11_p5 = scmp.ge.s32.totalorder %s14_s17, 4   ;;  %s577_s16 = smov %s579_s18 }
 0x12b   :  { %13 = sbr.rel (!%p11_p5) target bundleno = 2 (0x2), region = 83 }

</bundles_post_ra>
